<compile_context>
chip_gen: v7x
topology: tpu7x:2x2x1
jax: 0.10.0
libtpu: 0.0.40
codegen_flags: <defaults>
</compile_context>

<pallas_src>
import functools

import jax
import jax.numpy as jnp
from jax.experimental import pallas as pl
from jax.experimental.pallas import tpu as pltpu


ALPHA = 0.01  # PyTorch LeakyReLU default


def _lrelu(x, alpha=ALPHA):
    return jnp.where(x > 0, x, alpha * x)


def _round_up(x, m):
    return ((x + m - 1) // m) * m


def _auto_tm(B):
    """Pick the batch tile: >= 2 grid steps (v7x has 2 TCs), tile capped at
    1024 rows (past that is only a marginal roofline gain on v6e), rounded to
    a multiple of 16 for bf16 sublane packing."""
    tm = _round_up(max(1, pl.cdiv(B, 2)), 16)
    return max(16, min(1024, tm))


def disc2_kernel(feat_ref, pred_ref,
                 w1_ref,                    # 512 -> 16   (bf16)
                 w2_ref,                    # 2   -> 16   (f32)
                 w3a_ref, w3b_ref,          # 32  -> 32   rows split 16 + 16
                 w4_ref,                    # 32  -> 1
                 bias_ref,                  # packed [b1|b2|b3|b4|pad] (1, 128)
                 out_ref):
    feat = feat_ref[...]                    # (TM, 512) bf16
    pred = pred_ref[...]                    # (TM, 2)   f32

    bias = bias_ref[...]                    # (1, 128)  f32 — static slices are free
    b1 = bias[:, 0:16]
    b2 = bias[:, 16:32]
    b3 = bias[:, 32:64]
    b4 = bias[:, 64:65]

    # branch 1: shared_encoder_pred_fc (Linear 512->16 + LeakyReLU) on the MXU.
    # bf16 operands, f32 accumulation; activation math stays in f32.
    h1 = _lrelu(jnp.dot(feat, w1_ref[...],
                        preferred_element_type=jnp.float32) + b1)

    # branch 2: shared_classifier_pred_fc (Linear 2->16 + LeakyReLU) on the VPU
    # (a K=2 matmul is an almost-empty MXU push; this is free VALU filler
    #  hidden under the feature-tile DMA).
    w2 = w2_ref[...]                        # (2, 16) f32
    h2 = _lrelu(pred[:, 0:1] * w2[0:1, :]
                + pred[:, 1:2] * w2[1:2, :]
                + b2)

    # discrminator_pre_domain d_se10: Linear 32->32 on cat([h1, h2], 1),
    # expressed as a split matmul (== concat) to avoid in-kernel lane concat.
    h3 = _lrelu(jnp.dot(h1, w3a_ref[...], preferred_element_type=jnp.float32)
                + jnp.dot(h2, w3b_ref[...], preferred_element_type=jnp.float32)
                + b3)

    # fc_se12: Linear 32->1, no activation.  Output bytes are negligible vs the
    # 512-wide feature reads, so the lane-sparse (TM, 1) store is acceptable.
    out_ref[...] = (jnp.dot(h3, w4_ref[...],
                            preferred_element_type=jnp.float32) + b4)


@functools.partial(jax.jit, static_argnames=("tm",))
def discriminator2_forward(feature, prediction, kparams, tm=None):
    """feature: (B, 512) bf16 (producer-stored), prediction: (B, 2) f32,
    kparams: output of prepare_kernel_params."""
    B = feature.shape[0]
    if tm is None:
        tm = _auto_tm(B)
    grid = (pl.cdiv(B, tm),)

    const = lambda i: (0, 0)   # weights/bias: same block every step -> resident

    in_specs = [
        pl.BlockSpec((tm, 512), lambda i: (i, 0)),   # feature tile (bf16)
        pl.BlockSpec((tm, 2),   lambda i: (i, 0)),   # prediction tile
        pl.BlockSpec((512, 16), const),              # w1 (bf16)
        pl.BlockSpec((2, 16),   const),              # w2
        pl.BlockSpec((16, 32),  const),              # w3a (first 16 rows of w3)
        pl.BlockSpec((16, 32),  const),              # w3b (last 16 rows of w3)
        pl.BlockSpec((32, 1),   const),              # w4
        pl.BlockSpec((1, 128),  const),              # packed biases
    ]
    out_spec = pl.BlockSpec((tm, 1), lambda i: (i, 0))

    # Advisory estimate so XLA schedules surrounding ops around the custom call
    # sensibly when composed inside a larger jit (e.g. a GAN training step).
    flops = 2 * B * (512 * 16 + 2 * 16 + 32 * 32 + 32 * 1)
    bytes_accessed = (
        B * 512 * feature.dtype.itemsize          # dominant: feature reads
        + B * 2 * prediction.dtype.itemsize
        + B * 1 * 4                               # output
        + 512 * 16 * kparams["w1"].dtype.itemsize
        + (2 * 16 + 16 * 32 + 16 * 32 + 32 * 1 + 128) * 4)
    cost = pl.CostEstimate(flops=flops, transcendentals=0,
                           bytes_accessed=bytes_accessed)

    return pl.pallas_call(
        disc2_kernel,
        out_shape=jax.ShapeDtypeStruct((B, 1), jnp.float32),
        grid=grid,
        in_specs=in_specs,
        out_specs=out_spec,
        compiler_params=pltpu.CompilerParams(
            dimension_semantics=("parallel",)),     # batch sharded over TCs (v7x)
        cost_estimate=cost,
    )(feature, prediction,
      kparams["w1"], kparams["w2"],
      kparams["w3a"], kparams["w3b"], kparams["w4"],
      kparams["bias"])


def init_params(key):
    """PyTorch nn.Linear default init: U(-1/sqrt(fan_in), 1/sqrt(fan_in)).
    Weights stored as [in_features, out_features]."""
    def linear(k, fan_in, fan_out):
        kw, kb = jax.random.split(k)
        bound = 1.0 / jnp.sqrt(fan_in)
        w = jax.random.uniform(kw, (fan_in, fan_out), jnp.float32, -bound, bound)
        b = jax.random.uniform(kb, (fan_out,), jnp.float32, -bound, bound)
        return w, b

    k1, k2, k3, k4 = jax.random.split(key, 4)
    w1, b1 = linear(k1, 512, 16)   # d_se6
    w2, b2 = linear(k2, 2, 16)     # d_se8
    w3, b3 = linear(k3, 32, 32)    # d_se10
    w4, b4 = linear(k4, 32, 1)     # fc_se12
    return dict(w1=w1, b1=b1, w2=w2, b2=b2, w3=w3, b3=b3, w4=w4, b4=b4)


def prepare_kernel_params(p):
    """One-time (outside the jitted hot path) casts/splits/packs for the kernel."""
    bias = jnp.zeros((1, 128), jnp.float32)
    bias = bias.at[0, 0:16].set(p["b1"])
    bias = bias.at[0, 16:32].set(p["b2"])
    bias = bias.at[0, 32:64].set(p["b3"])
    bias = bias.at[0, 64:65].set(p["b4"])
    return dict(
        w1=p["w1"].astype(jnp.bfloat16),     # bf16 weight for the HBM-bound layer
        w2=p["w2"],
        w3a=p["w3"][:16, :], w3b=p["w3"][16:, :],
        w4=p["w4"],
        bias=bias,
    )


def reference_forward(feature, prediction, p):
    """Pure-JAX reference; accepts bf16 feature/w1 and upcasts (matches kernel
    semantics of f32 accumulation over bf16-rounded operands)."""
    f32 = jnp.float32
    hi = jax.lax.Precision.HIGHEST
    f = feature.astype(f32)
    w1 = p["w1"].astype(f32)
    h1 = _lrelu(jnp.dot(f, w1, precision=hi) + p["b1"])
    h2 = _lrelu(jnp.dot(prediction, p["w2"], precision=hi) + p["b2"])
    h3 = _lrelu(jnp.dot(jnp.concatenate([h1, h2], axis=1), p["w3"],
                        precision=hi) + p["b3"])
    return jnp.dot(h3, p["w4"], precision=hi) + p["b4"]


if __name__ == "__main__":
    key = jax.random.PRNGKey(0)
    kp, kf, kc = jax.random.split(key, 3)

    B = 32
    raw_params = init_params(kp)
    kparams = prepare_kernel_params(raw_params)

    # Producer-side bf16 features (cast once, outside the jitted forward) and
    # f32 classifier logits.
    feature = jax.random.normal(kf, (B, 512), jnp.float32).astype(jnp.bfloat16)
    prediction = jax.random.normal(kc, (B, 2), jnp.float32)

    # tm=None -> auto (16 rows/step here => 2 grid steps, exercising the
    # multi-step pipeline and v7x dual-TC sharding even at this small size).
    out = discriminator2_forward(feature, prediction, kparams)
    out = jax.block_until_ready(out)

    ref_params = dict(raw_params, w1=kparams["w1"])   # compare vs bf16-rounded w1
    ref = reference_forward(feature, prediction, ref_params)

    assert out.shape == (B, 1)
    assert jnp.allclose(out, ref, atol=1e-3, rtol=1e-3), "mismatch vs JAX reference"

    print("KERNEL_OK")
</pallas_src>

<mosaic_0001>
module attributes {stable_mosaic.version = 11 : i64} {
  func.func @disc2_kernel(%arg0: i32, %arg1: memref<16x512xbf16, #tpu.memory_space<vmem>>, %arg2: memref<16x2xf32, #tpu.memory_space<vmem>>, %arg3: memref<512x16xbf16, #tpu.memory_space<vmem>>, %arg4: memref<2x16xf32, #tpu.memory_space<vmem>>, %arg5: memref<16x32xf32, #tpu.memory_space<vmem>>, %arg6: memref<16x32xf32, #tpu.memory_space<vmem>>, %arg7: memref<32x1xf32, #tpu.memory_space<vmem>>, %arg8: memref<1x128xf32, #tpu.memory_space<vmem>>, %arg9: memref<16x1xf32, #tpu.memory_space<vmem>>) attributes {dimension_semantics = [#tpu.dimension_semantics<parallel>], iteration_bounds = array<i64: 2>, scalar_prefetch = 0 : i64, scratch_operands = 0 : i64, tpu.core_type = #tpu.core_type<tc>, window_params = [{transform_indices = @transform_0, window_bounds = array<i64: 16, 512>}, {transform_indices = @transform_1, window_bounds = array<i64: 16, 2>}, {pipeline_mode = #tpu.pipeline_mode<synchronous>, transform_indices = @transform_2, window_bounds = array<i64: 512, 16>}, {pipeline_mode = #tpu.pipeline_mode<synchronous>, transform_indices = @transform_3, window_bounds = array<i64: 2, 16>}, {pipeline_mode = #tpu.pipeline_mode<synchronous>, transform_indices = @transform_4, window_bounds = array<i64: 16, 32>}, {pipeline_mode = #tpu.pipeline_mode<synchronous>, transform_indices = @transform_5, window_bounds = array<i64: 16, 32>}, {pipeline_mode = #tpu.pipeline_mode<synchronous>, transform_indices = @transform_6, window_bounds = array<i64: 32, 1>}, {pipeline_mode = #tpu.pipeline_mode<synchronous>, transform_indices = @transform_7, window_bounds = array<i64: 1, 128>}, {transform_indices = @transform_8, window_bounds = array<i64: 16, 1>}]} {
    %c0 = arith.constant 0 : index
    %c0_0 = arith.constant 0 : index
    %0 = vector.load %arg1[%c0, %c0_0] : memref<16x512xbf16, #tpu.memory_space<vmem>>, vector<16x512xbf16>
    %c0_1 = arith.constant 0 : index
    %c0_2 = arith.constant 0 : index
    %1 = vector.load %arg2[%c0_1, %c0_2] : memref<16x2xf32, #tpu.memory_space<vmem>>, vector<16x2xf32>
    %c0_3 = arith.constant 0 : index
    %c0_4 = arith.constant 0 : index
    %2 = vector.load %arg8[%c0_3, %c0_4] : memref<1x128xf32, #tpu.memory_space<vmem>>, vector<1x128xf32>
    %3 = vector.extract_strided_slice %2 {offsets = [0, 0], sizes = [1, 16], strides = [1, 1]} : vector<1x128xf32> to vector<1x16xf32>
    %4 = vector.extract_strided_slice %2 {offsets = [0, 16], sizes = [1, 16], strides = [1, 1]} : vector<1x128xf32> to vector<1x16xf32>
    %5 = vector.extract_strided_slice %2 {offsets = [0, 32], sizes = [1, 32], strides = [1, 1]} : vector<1x128xf32> to vector<1x32xf32>
    %6 = vector.extract_strided_slice %2 {offsets = [0, 64], sizes = [1, 1], strides = [1, 1]} : vector<1x128xf32> to vector<1x1xf32>
    %c0_5 = arith.constant 0 : index
    %c0_6 = arith.constant 0 : index
    %7 = vector.load %arg3[%c0_5, %c0_6] : memref<512x16xbf16, #tpu.memory_space<vmem>>, vector<512x16xbf16>
    %cst = arith.constant dense<0.000000e+00> : vector<16x16xf32>
    %8 = tpu.matmul %0, %7, %cst {dimension_numbers = #tpu.dot_dimension_numbers<[1], [0], [0], [1], [0, 0, 1, 1], [], []>} : vector<16x512xbf16>, vector<512x16xbf16>, vector<16x16xf32> -> vector<16x16xf32>
    %9 = vector.broadcast %3 : vector<1x16xf32> to vector<16x16xf32>
    %10 = arith.addf %8, %9 : vector<16x16xf32>
    %cst_7 = arith.constant 0.000000e+00 : f32
    %11 = vector.broadcast %cst_7 : f32 to vector<16x16xf32>
    %12 = arith.cmpf ogt, %10, %11 : vector<16x16xf32>
    %cst_8 = arith.constant 0.00999999977 : f32
    %13 = vector.broadcast %cst_8 : f32 to vector<16x16xf32>
    %14 = arith.mulf %13, %10 : vector<16x16xf32>
    %15 = arith.select %12, %10, %14 : vector<16x16xi1>, vector<16x16xf32>
    %c0_9 = arith.constant 0 : index
    %c0_10 = arith.constant 0 : index
    %16 = vector.load %arg4[%c0_9, %c0_10] : memref<2x16xf32, #tpu.memory_space<vmem>>, vector<2x16xf32>
    %17 = vector.extract_strided_slice %1 {offsets = [0, 0], sizes = [16, 1], strides = [1, 1]} : vector<16x2xf32> to vector<16x1xf32>
    %18 = vector.extract_strided_slice %16 {offsets = [0, 0], sizes = [1, 16], strides = [1, 1]} : vector<2x16xf32> to vector<1x16xf32>
    %19 = vector.broadcast %17 : vector<16x1xf32> to vector<16x16xf32>
    %20 = vector.broadcast %18 : vector<1x16xf32> to vector<16x16xf32>
    %21 = arith.mulf %19, %20 : vector<16x16xf32>
    %22 = vector.extract_strided_slice %1 {offsets = [0, 1], sizes = [16, 1], strides = [1, 1]} : vector<16x2xf32> to vector<16x1xf32>
    %23 = vector.extract_strided_slice %16 {offsets = [1, 0], sizes = [1, 16], strides = [1, 1]} : vector<2x16xf32> to vector<1x16xf32>
    %24 = vector.broadcast %22 : vector<16x1xf32> to vector<16x16xf32>
    %25 = vector.broadcast %23 : vector<1x16xf32> to vector<16x16xf32>
    %26 = arith.mulf %24, %25 : vector<16x16xf32>
    %27 = arith.addf %21, %26 : vector<16x16xf32>
    %28 = vector.broadcast %4 : vector<1x16xf32> to vector<16x16xf32>
    %29 = arith.addf %27, %28 : vector<16x16xf32>
    %cst_11 = arith.constant 0.000000e+00 : f32
    %30 = vector.broadcast %cst_11 : f32 to vector<16x16xf32>
    %31 = arith.cmpf ogt, %29, %30 : vector<16x16xf32>
    %cst_12 = arith.constant 0.00999999977 : f32
    %32 = vector.broadcast %cst_12 : f32 to vector<16x16xf32>
    %33 = arith.mulf %32, %29 : vector<16x16xf32>
    %34 = arith.select %31, %29, %33 : vector<16x16xi1>, vector<16x16xf32>
    %c0_13 = arith.constant 0 : index
    %c0_14 = arith.constant 0 : index
    %35 = vector.load %arg5[%c0_13, %c0_14] : memref<16x32xf32, #tpu.memory_space<vmem>>, vector<16x32xf32>
    %cst_15 = arith.constant dense<0.000000e+00> : vector<16x32xf32>
    %36 = tpu.matmul %15, %35, %cst_15 {dimension_numbers = #tpu.dot_dimension_numbers<[1], [0], [0], [1], [0, 0, 1, 1], [], []>} : vector<16x16xf32>, vector<16x32xf32>, vector<16x32xf32> -> vector<16x32xf32>
    %c0_16 = arith.constant 0 : index
    %c0_17 = arith.constant 0 : index
    %37 = vector.load %arg6[%c0_16, %c0_17] : memref<16x32xf32, #tpu.memory_space<vmem>>, vector<16x32xf32>
    %cst_18 = arith.constant dense<0.000000e+00> : vector<16x32xf32>
    %38 = tpu.matmul %34, %37, %cst_18 {dimension_numbers = #tpu.dot_dimension_numbers<[1], [0], [0], [1], [0, 0, 1, 1], [], []>} : vector<16x16xf32>, vector<16x32xf32>, vector<16x32xf32> -> vector<16x32xf32>
    %39 = arith.addf %36, %38 : vector<16x32xf32>
    %40 = vector.broadcast %5 : vector<1x32xf32> to vector<16x32xf32>
    %41 = arith.addf %39, %40 : vector<16x32xf32>
    %cst_19 = arith.constant 0.000000e+00 : f32
    %42 = vector.broadcast %cst_19 : f32 to vector<16x32xf32>
    %43 = arith.cmpf ogt, %41, %42 : vector<16x32xf32>
    %cst_20 = arith.constant 0.00999999977 : f32
    %44 = vector.broadcast %cst_20 : f32 to vector<16x32xf32>
    %45 = arith.mulf %44, %41 : vector<16x32xf32>
    %46 = arith.select %43, %41, %45 : vector<16x32xi1>, vector<16x32xf32>
    %c0_21 = arith.constant 0 : index
    %c0_22 = arith.constant 0 : index
    %47 = vector.load %arg7[%c0_21, %c0_22] : memref<32x1xf32, #tpu.memory_space<vmem>>, vector<32x1xf32>
    %cst_23 = arith.constant dense<0.000000e+00> : vector<16x1xf32>
    %48 = tpu.matmul %46, %47, %cst_23 {dimension_numbers = #tpu.dot_dimension_numbers<[1], [0], [0], [1], [0, 0, 1, 1], [], []>} : vector<16x32xf32>, vector<32x1xf32>, vector<16x1xf32> -> vector<16x1xf32>
    %49 = vector.broadcast %6 : vector<1x1xf32> to vector<16x1xf32>
    %50 = arith.addf %48, %49 : vector<16x1xf32>
    %c0_24 = arith.constant 0 : index
    %c0_25 = arith.constant 0 : index
    %51 = vector.load %arg9[%c0_24, %c0_25] : memref<16x1xf32, #tpu.memory_space<vmem>>, vector<16x1xf32>
    tpu.vector_store %arg9[%c0_24, %c0_25], %50 {strides = array<i32>} : memref<16x1xf32, #tpu.memory_space<vmem>>, vector<16x1xf32>,
    return
  }
  func.func @transform_0(%arg0: i32) -> (i32, i32) {
    %c0_i32 = arith.constant 0 : i32
    %c0_i32_0 = arith.constant 0 : i32
    return %arg0, %c0_i32 : i32, i32
  }
  func.func @transform_1(%arg0: i32) -> (i32, i32) {
    %c0_i32 = arith.constant 0 : i32
    %c0_i32_0 = arith.constant 0 : i32
    return %arg0, %c0_i32 : i32, i32
  }
  func.func @transform_2(%arg0: i32) -> (i32, i32) {
    %c0_i32 = arith.constant 0 : i32
    %c0_i32_0 = arith.constant 0 : i32
    %c0_i32_1 = arith.constant 0 : i32
    return %c0_i32, %c0_i32_0 : i32, i32
  }
  func.func @transform_3(%arg0: i32) -> (i32, i32) {
    %c0_i32 = arith.constant 0 : i32
    %c0_i32_0 = arith.constant 0 : i32
    %c0_i32_1 = arith.constant 0 : i32
    return %c0_i32, %c0_i32_0 : i32, i32
  }
  func.func @transform_4(%arg0: i32) -> (i32, i32) {
    %c0_i32 = arith.constant 0 : i32
    %c0_i32_0 = arith.constant 0 : i32
    %c0_i32_1 = arith.constant 0 : i32
    return %c0_i32, %c0_i32_0 : i32, i32
  }
  func.func @transform_5(%arg0: i32) -> (i32, i32) {
    %c0_i32 = arith.constant 0 : i32
    %c0_i32_0 = arith.constant 0 : i32
    %c0_i32_1 = arith.constant 0 : i32
    return %c0_i32, %c0_i32_0 : i32, i32
  }
  func.func @transform_6(%arg0: i32) -> (i32, i32) {
    %c0_i32 = arith.constant 0 : i32
    %c0_i32_0 = arith.constant 0 : i32
    %c0_i32_1 = arith.constant 0 : i32
    return %c0_i32, %c0_i32_0 : i32, i32
  }
  func.func @transform_7(%arg0: i32) -> (i32, i32) {
    %c0_i32 = arith.constant 0 : i32
    %c0_i32_0 = arith.constant 0 : i32
    %c0_i32_1 = arith.constant 0 : i32
    return %c0_i32, %c0_i32_0 : i32, i32
  }
  func.func @transform_8(%arg0: i32) -> (i32, i32) {
    %c0_i32 = arith.constant 0 : i32
    %c0_i32_0 = arith.constant 0 : i32
    return %arg0, %c0_i32 : i32, i32
  }
}

</mosaic_0001>

<bundles_post_ra>
// kernel: discriminator2_forward.1
= control target key start
LH: loop header
LB: loop body
LE: loop exit
PB: predicated region body
PF: predicated region fallthrough
CT: control target
= control target key end

     0   :  { %s1366_s27 = smov 0   ;;  %s1533_s0 = inlined_call_operand.vmem [shape: bf16[32,512], index: 0, kind: input, shape index: {}]   ;;  %s1534_s1 = inlined_call_operand.vmem [shape: f32[32,2], index: 1, kind: input, shape index: {}]   ;;  %s1535_s2 = inlined_call_operand.vmem [shape: bf16[512,16], index: 2, kind: input, shape index: {}]   ;;  %s1536_s3 = inlined_call_operand.vmem [shape: f32[2,16], index: 3, kind: input, shape index: {}]   ;;  %s1537_s4 = inlined_call_operand.vmem [shape: f32[16,32], index: 4, kind: input, shape index: {}]   ;;  %s1538_s5 = inlined_call_operand.vmem [shape: f32[16,32], index: 5, kind: input, shape index: {}]   ;;  %s1539_s6 = inlined_call_operand.vmem [shape: f32[32,1], index: 6, kind: input, shape index: {}]   ;;  %s1540_s7 = inlined_call_operand.vmem [shape: f32[1,128], index: 7, kind: input, shape index: {}]   ;;  %s1541_s8 = inlined_call_operand.vmem [shape: f32[32,1], index: 8, kind: output, shape index: {}]  }
   0x1 LB: > { %s1094_s28 = sadd.s32 4294967295, %s1314_s27   ;;  %p1098_p0 = scmp.ge.s32.totalorder %s1314_s27, 1  ;;  %s1314_s27 = sphi %s1366_s27, %s18_s27  }
   0x2   : > { %p275_p1 = scmp.lt.s32.totalorder %s1314_s27, 3 }
   0x4   : > { %p276_p2 = pnand %p1098_p0, %p275_p1 }
   0x5   : > { %v1270_v0 = vld [vmem:[%s1535_s2 + $0x40] sm:$0xff] (!%p276_p2)   ;;  %v1316_v4 = vmov (!%p276_p2), 0   ;;  %v1274_v5 = vld [vmem:[%s1535_s2 + $0x48] sm:$0xff] (!%p276_p2)   ;;  %v1278_v9 = vld [vmem:[%s1535_s2 + $0x50] sm:$0xff] (!%p276_p2)   ;;  %s1099_s19 = sshll.u32 (!%p276_p2), %s1094_s28, 1  ;;  %v1317_v39 = vmov (!%p276_p2), 1   ;;  %v723_v50 = vlaneseq (!%p276_p2) }
   0x6   : > { %279 = sbr.rel (%p276_p2) target bundleno = 698 (0x2ba), region = 52  ;;  %v1271_v1 = vld [vmem:[%s1535_s2 + $0xc0] sm:$0xff] (!%p276_p2)   ;;  %1152 = vmatprep.subr.bf16.mxu0 (!%p276_p2), %v1270_v0  ;;  %1268 = vset.pattern.permute.xlu1 (!%p276_p2), %v1316_v4  ;;  %v1275_v6 = vld [vmem:[%s1535_s2 + $0xc8] sm:$0xff] (!%p276_p2)   ;;  %v1279_v10 = vld [vmem:[%s1535_s2 + $0xd0] sm:$0xff] (!%p276_p2)   ;;  %p316_p3 = scmp.lt.s32.totalorder (!%p276_p2), %s1099_s19, 3  ;;  %vm760_vm2 = vcmask (!%p276_p2), 130048  }
   0x7   : > { %v1272_v2 = vld [vmem:[%s1535_s2] sm:$0xff] (!%p276_p2)   ;;  %1174 = vmatprep.subr.bf16.mxu1 (!%p276_p2), %v1271_v1  ;;  %1266 = vset.pattern.permute.xlu0 (!%p276_p2), %v1316_v4  ;;  %v1276_v7 = vld [vmem:[%s1535_s2 + $0x8] sm:$0xff] (!%p276_p2)   ;;  %v1280_v11 = vld [vmem:[%s1535_s2 + $0x10] sm:$0xff] (!%p276_p2)   ;;  %s1319_s15 = smov (!%p276_p2), 96   ;;  %v724_v51 = vshrl.u32 (!%p276_p2), %v723_v50, 7  ;;  %s1320_s23 = smov (!%p276_p2), 64  }
   0x8   : > { %v1273_v3 = vld [vmem:[%s1535_s2 + $0x80] sm:$0xff] (!%p276_p2)   ;;  %1153 = vmatpush3.bf16.msra.mxu0 (!%p276_p2), %v1272_v2  ;;  %v1277_v8 = vld [vmem:[%s1535_s2 + $0x88] sm:$0xff] (!%p276_p2)   ;;  %v1281_v12 = vld [vmem:[%s1535_s2 + $0x90] sm:$0xff] (!%p276_p2)   ;;  %vm941_vm7 = vcmask (!%p276_p2), 261120   ;;  %vm1023_vm8 = vcmask (!%p276_p2), 7168  }
   0x9   : > { %1175 = vmatpush3.bf16.msra.mxu1 (!%p276_p2), %v1273_v3  ;;  %1154 = vmatprep.subr.bf16.mxu0 (!%p276_p2), %v1274_v5  ;;  %v1282_v13 = vld [vmem:[%s1535_s2 + $0x58] sm:$0xff] (!%p276_p2)   ;;  %v1286_v17 = vld [vmem:[%s1535_s2 + $0x60] sm:$0xff] (!%p276_p2)   ;;  %v1290_v21 = vld [vmem:[%s1535_s2 + $0x68] sm:$0xff] (!%p276_p2)   ;;  %v725_v52 = vsub.s32 (!%p276_p2), 0, %v724_v51  ;;  %v739_v54 = vsub.s32 (!%p276_p2), 1, %v724_v51 }
   0xa   : > { %1176 = vmatprep.subr.bf16.mxu1 (!%p276_p2), %v1275_v6  ;;  %v1283_v14 = vld [vmem:[%s1535_s2 + $0xd8] sm:$0xff] (!%p276_p2)   ;;  %v1287_v18 = vld [vmem:[%s1535_s2 + $0xe0] sm:$0xff] (!%p276_p2)   ;;  %v1291_v22 = vld [vmem:[%s1535_s2 + $0xe8] sm:$0xff] (!%p276_p2)  }
   0xb   : > { %v1284_v15 = vld [vmem:[%s1535_s2 + $0x18] sm:$0xff] (!%p276_p2)   ;;  %v1288_v19 = vld [vmem:[%s1535_s2 + $0x20] sm:$0xff] (!%p276_p2)   ;;  %v1292_v23 = vld [vmem:[%s1535_s2 + $0x28] sm:$0xff] (!%p276_p2)  }
   0xc   : > { %1155 = vmatpush3.bf16.msra.mxu0 (!%p276_p2), %v1276_v7  ;;  %v1285_v16 = vld [vmem:[%s1535_s2 + $0x98] sm:$0xff] (!%p276_p2)   ;;  %v1289_v20 = vld [vmem:[%s1535_s2 + $0xa0] sm:$0xff] (!%p276_p2)   ;;  %v1293_v24 = vld [vmem:[%s1535_s2 + $0xa8] sm:$0xff] (!%p276_p2)  }
   0xd   : > { %1177 = vmatpush3.bf16.msra.mxu1 %v1277_v8  ;;  %1156 = vmatprep.subr.bf16.mxu0 %v1278_v9  ;;  %s1543_s19 = smov (!%p316_p3, %s1099_s19), 3  ;;  %v1294_v25 = vld [vmem:[%s1535_s2 + $0x70] sm:$0xff]   ;;  %v1298_v29 = vld [vmem:[%s1535_s2 + $0x78] sm:$0xff]   ;;  %v1487_v40 = vld [vmem:[%s1540_s7] ss:$0 sm:$0xff] }
   0xe   : > { %1178 = vmatprep.subr.bf16.mxu1 %v1279_v10  ;;  %v1295_v26 = vld [vmem:[%s1535_s2 + $0xf0] sm:$0xff]   ;;  %s1151_s22 = sshll.u32 %s1543_s19, 4  ;;  %s1103_s29 = sshll.u32 %s1543_s19, 3  ;;  %v1299_v30 = vld [vmem:[%s1535_s2 + $0xf8] sm:$0xff]   ;;  %v758_v41 = vld [vmem:[%s1538_s5] sm:$0xff] }
   0xf   : > { %v1296_v27 = vld [vmem:[%s1535_s2 + $0x30] sm:$0xff]   ;;  %s320_s11 = scalar_lea.vmem %s1533_s0, %s1151_s22  ;;  %v1300_v31 = vld [vmem:[%s1535_s2 + $0x38] sm:$0xff]   ;;  %s326_s18 = scalar_lea.vmem %s1534_s1, %s1103_s29  ;;  %v759_v42 = vld [vmem:[%s1538_s5 + $0x8] sm:$0xff] }
  0x10   : > { %1157 = vmatpush3.bf16.msra.mxu0 %v1280_v11  ;;  %v1297_v28 = vld [vmem:[%s1535_s2 + $0xb0] sm:$0xff]   ;;  %v1301_v32 = vld [vmem:[%s1535_s2 + $0xb8] sm:$0xff]   ;;  %v340_v37 = vld [vmem:[%s326_s18 + $0x8] sm:$0xff]  ;;  %s1318_s22 = smov 112   ;;  %v1235_v43 = vpack.c.bf16 %v759_v42, %v758_v41  ;;  %s332_s26 = scalar_lea.vmem %s1541_s8, %s1103_s29 }
  0x11   : > { %1179 = vmatpush3.bf16.msra.mxu1 %v1281_v12  ;;  %1158 = vmatprep.subr.bf16.mxu0 %v1282_v13  ;;  %v1302_v33 = vld [vmem:[%s320_s11] ss:$16 sps:$4 sm:$0xff]   ;;  %v1304_v34 = vld [vmem:[%s320_s11 + $0x4] ss:$16 sps:$4 sm:$0xff]   ;;  %v1305_v35 = vld [vmem:[%s320_s11 + $0x8] ss:$16 sps:$4 sm:$0xff]  }
  0x12   : > { %1180 = vmatprep.subr.bf16.mxu1 %v1283_v14  ;;  %v1307_v36 = vld [vmem:[%s320_s11 + $0xc] ss:$16 sps:$4 sm:$0xff]   ;;  %656 = vmatprep.mubr.bf16.mxu0 %v1304_v34  ;;  %v339_v38 = vld [vmem:[%s326_s18] sm:$0xff] }
  0x13   : > { %720 = vperm.xlu1 %1268, %v340_v37   ;;  %697 = vmatprep.mubr.bf16.mxu1 %v1307_v36  ;;  %v756_v44 = vld [vmem:[%s1537_s4] sm:$0xff]  ;;  %v757_v45 = vld [vmem:[%s1537_s4 + $0x8] sm:$0xff] }
  0x14   : > { %1159 = vmatpush3.bf16.msra.mxu0 %v1284_v15  ;;  %715 = vperm.xlu0 %1266, %v339_v38   ;;  %v1239_v46 = vpack.c.bf16 %v757_v45, %v756_v44  ;;  %v934_v47 = vld [vmem:[%s1539_s6] sm:$0xff]  ;;  %v935_v48 = vld [vmem:[%s1539_s6 + $0x8] sm:$0xff] }
  0x15   : > { %1181 = vmatpush3.bf16.msra.mxu1 %v1285_v16  ;;  %1160 = vmatprep.subr.bf16.mxu0 %v1286_v17  ;;  %v1243_v49 = vpack.c.bf16 %v935_v48, %v934_v47  ;;  %v712_v53 = vld [vmem:[%s1536_s3] sm:$0x3] }
  0x16   : > { %1182 = vmatprep.subr.bf16.mxu1 %v1287_v18  ;;  %v726_v55 = vrot.slane %v712_v53, %v725_v52  ;;  %v740_v58 = vrot.slane %v712_v53, %v739_v54 }
  0x17   : > { %1269 = vset.pattern.permute.xlu1 %v1317_v39 }
  0x18   : > { %1161 = vmatpush3.bf16.msra.mxu0 %v1288_v19  ;;  %734 = vperm.xlu1 %1269, %v340_v37  }
  0x19   : > { %1183 = vmatpush3.bf16.msra.mxu1 %v1289_v20  ;;  %1162 = vmatprep.subr.bf16.mxu0 %v1290_v21 }
  0x1a   : > { %1184 = vmatprep.subr.bf16.mxu1 %v1291_v22  ;;  %1267 = vset.pattern.permute.xlu0 %v1317_v39 }
  0x1b   : > { %730 = vperm.xlu0 %1267, %v339_v38  }
  0x1c   : > { %1163 = vmatpush3.bf16.msra.mxu0 %v1292_v23  ;;  %745 = vrot.lane.b32.xlu1 %v1487_v40, %s1318_s22 }
  0x1d   : > { %1185 = vmatpush3.bf16.msra.mxu1 %v1293_v24  ;;  %1164 = vmatprep.subr.bf16.mxu0 %v1294_v25 }
  0x1e   : > { %1186 = vmatprep.subr.bf16.mxu1 %v1295_v26 }
  0x1f   : > { %923 = vrot.lane.b32.xlu0 %v1487_v40, %s1319_s15 }
  0x20   : > { %1165 = vmatpush3.bf16.msra.mxu0 %v1296_v27  ;;  %938 = vrot.lane.b32.xlu1 %v1487_v40, %s1320_s23 }
  0x21   : > { %1187 = vmatpush3.bf16.msra.mxu1 %v1297_v28  ;;  %1166 = vmatprep.subr.bf16.mxu0 %v1298_v29 }
  0x22   : > { %1188 = vmatprep.subr.bf16.mxu1 %v1299_v30  ;;  %v936_v30 = vld [vmem:[%s1539_s6 + $0x10] sm:$0xff] }
  0x24   : > { %1167 = vmatpush3.bf16.msra.mxu0 %v1300_v31  ;;  %v937_v31 = vld [vmem:[%s1539_s6 + $0x18] sm:$0xff] }
  0x25   : > { %1189 = vmatpush3.bf16.msra.mxu1 %v1301_v32  ;;  %1236 = vmatprep.subr.bf16.mxu0 %v1235_v43  ;;  %v1247_v32 = vpack.c.bf16 %v937_v31, %v936_v30 }
  0x26   : > { %1244 = vmatprep.subr.bf16.mxu1 %v1243_v49 }
  0x27   : > { %657 = vmatmul.mubr.bf16.vlgmr.msra.gmra.mrb[0].mxu0 %v1302_v33 }
  0x28   : > { %698 = vmatmul.mubr.bf16.vlgmr.msra.gmra.mrb[0].mxu1 %v1305_v35  ;;  %1238 = vmatpush3.bf16.msra.mxu0 %v1235_v43 }
  0x29   : > { %1240 = vmatprep.subr.bf16.mxu0 %v1239_v46  ;;  %1246 = vmatpush3.bf16.msra.mxu1 %v1243_v49 }
  0x2a   : > { %1248 = vmatprep.subr.bf16.mxu1 %v1247_v32 }
  0x2d   : > { %1250 = vmatpush3.bf16.msra.mxu1 %v1247_v32 }
  0x92   : > { %v721_v56 = vpop.permute.xlu1 %720 }
  0x93   : > { %v716_v57 = vpop.permute.xlu0 %715  ;;  %v728_v59 = vmul.f32 %v726_v55, %v721_v56 }
  0x94   : > { %v727_v61 = vmul.f32 %v726_v55, %v716_v57 }
  0x97   : > { %v735_v60 = vpop.permute.xlu1 %734 }
  0x98   : > { %v742_v62 = vmul.f32 %v740_v58, %v735_v60 }
  0x9a   : > { %v731_v63 = vpop.permute.xlu0 %730  ;;  %v744_v0 = vadd.f32 %v742_v62, %v728_v59 }
  0x9b   : > { %v741_v1 = vmul.f32 %v740_v58, %v731_v63  ;;  %v746_v2 = vpop.permute.xlu1 %745 }
  0x9c   : > { %v749_v4 = vadd.f32 %v746_v2, %v744_v0 }
  0x9d   : > { %v743_v3 = vadd.f32 %v741_v1, %v727_v61 }
  0x9e   : > { %vm751_vm0 = vcmp.gt.f32.partialorder %v749_v4, 0.0  ;;  %v753_v6 = vmul.f32 0.01, %v749_v4  ;;  %v924_v33 = vpop.permute.xlu0 %923 }
  0x9f   : > { %v748_v5 = vadd.f32 %v746_v2, %v743_v3  ;;  %v939_v43 = vpop.permute.xlu1 %938 }
  0xa0   : > { %v755_v8 = vsel %vm751_vm0, %v749_v4, %v753_v6 }
  0xa1   : > { %v752_v7 = vmul.f32 0.01, %v748_v5  ;;  %vm750_vm1 = vcmp.gt.f32.partialorder %v748_v5, 0.0 }
  0xa3   : > { %v754_v9 = vsel %vm750_vm1, %v748_v5, %v752_v7 }
  0xa4   : > { %1214 = vmatprep.mubr.msk.f32.mxu0 %vm760_vm2, %v754_v9 }
  0xa5   : > { %1215 = vmatmul.mubr.msk.f32.vlgmr.msra.gmra.mrb[4].mxu0 %vm760_vm2, %v755_v8 }
  0xa6   : > { %1242 = vmatpush3.bf16.msra.mxu0 %v1239_v46 }
  0xfa   : > { %v1168_v10 = vpop.f32.mrb[0].mxu0 }
  0xfb   : > { %v1190_v11 = vpop.f32.mrb[0].mxu1  ;;  %v1169_v12 = vpop.f32.mrb[1].mxu0 }
  0xfc   : > { %v1170_v13 = vadd.f32 %v1169_v12, %v1168_v10  ;;  %v1191_v14 = vpop.f32.mrb[1].mxu1  ;;  %v1171_v15 = vpop.f32.mrb[2].mxu0 }
  0xfd   : > { %v1192_v16 = vadd.f32 %v1191_v14, %v1190_v11  ;;  %v1193_v17 = vpop.f32.mrb[2].mxu1  ;;  %v1172_v18 = vpop.f32.mrb[3].mxu0 }
  0xfe   : > { %v659_v19 = vadd.f32 %v1170_v13, %v1487_v40  ;;  %v1173_v20 = vadd.f32 %v1172_v18, %v1171_v15  ;;  %v1194_v21 = vpop.f32.mrb[3].mxu1 }
  0xff   : > { %v1195_v22 = vadd.f32 %v1194_v21, %v1193_v17 }
 0x100   : > { %v700_v23 = vadd.f32 %v1192_v16, %v659_v19  ;;  %v662_v24 = vadd.f32 %v1173_v20, %v1487_v40 }
 0x102   : > { %v708_v25 = vmul.f32 0.01, %v700_v23  ;;  %v703_v26 = vadd.f32 %v1195_v22, %v662_v24  ;;  %vm706_vm3 = vcmp.gt.f32.partialorder %v700_v23, 0.0 }
 0x104   : > { %vm707_vm4 = vcmp.gt.f32.partialorder %v703_v26, 0.0  ;;  %v709_v27 = vmul.f32 0.01, %v703_v26  ;;  %v710_v28 = vsel %vm706_vm3, %v700_v23, %v708_v25 }
 0x105   : > { %1221 = vmatprep.mubr.msk.f32.mxu0 %vm760_vm2, %v710_v28 }
 0x106   : > { %v711_v29 = vsel %vm707_vm4, %v703_v26, %v709_v27 }
 0x107   : > { %1222 = vmatmul.mubr.msk.f32.vlgmr.msra.gmra.mrb[4].mxu0 %vm760_vm2, %v711_v29 }
 0x1da   : > { %v1223_v34 = vpop.f32.mrb[4].mxu0 }
 0x1db   : > { %v927_v35 = vadd.f32 %v1223_v34, %v924_v33  ;;  %v914_v36 = vpop.f32.mrb[5].mxu0 }
 0x1dc   : > { %v926_v37 = vadd.f32 %v924_v33, %v914_v36 }
 0x1dd   : > { %v931_v38 = vmul.f32 0.01, %v927_v35  ;;  %vm929_vm5 = vcmp.gt.f32.partialorder %v927_v35, 0.0 }
 0x1de   : > { %vm928_vm6 = vcmp.gt.f32.partialorder %v926_v37, 0.0  ;;  %v930_v39 = vmul.f32 0.01, %v926_v37 }
 0x1df   : > { %v933_v42 = vsel %vm929_vm5, %v927_v35, %v931_v38 }
 0x1e0   : > { %v932_v41 = vsel %vm928_vm6, %v926_v37, %v930_v39 }
 0x1e1   : > { %1232 = vmatprep.mubr.msk.f32.mxu1 %vm941_vm7, %v932_v41 }
 0x1e2   : > { %1233 = vmatmul.mubr.msk.f32.vlgmr.msra.gmra.mrb[4].mxu1 %vm941_vm7, %v933_v42 }
 0x2b5   : > { %v1234_v44 = vpop.f32.mrb[4].mxu1 }
 0x2b6   : > { %v1014_v40 = vpop.f32.mrb[5].mxu1  ;;  %v1020_v46 = vadd.f32 %v1234_v44, %v939_v43 }
 0x2b7   : > { %v1015_v45 = vadd.f32 %v1014_v40, %v939_v43 }
 0x2b8   : > { %1025 = vst.msk [vmem:[%s332_s26 + $0x8] sm:$0xff] %vm1023_vm8, %v1020_v46 }
 0x2b9   : > { %1024 = vst.msk [vmem:[%s332_s26] sm:$0xff] %vm1023_vm8, %v1015_v45 }
 0x2ba PF: > { %s18_s27 = sadd.s32 1, %s1314_s27  }
 0x2bb   : > { %p15_p4 = scmp.ge.s32.totalorder %s18_s27, 4  }
 0x2bd   :  { %17 = sbr.rel (!%p15_p4) target bundleno = 1 (0x1), region = 85 }

</bundles_post_ra>
